<compile_context>
chip_gen: v7x
topology: tpu7x:2x2x1
jax: 0.10.0
libtpu: 0.0.40
codegen_flags: <defaults>
</compile_context>

<pallas_src>
import math

import numpy as np
import jax
import jax.numpy as jnp
from jax.experimental import pallas as pl
from jax.experimental.pallas import tpu as pltpu


# ------------------------------- Pallas kernels ------------------------------------
# Block shapes seen by the kernels:
#   x_ref : (RB, 2, W2, 2*C)  -- RB output rows; dim1 = row-in-pair,
#                                lane dim packs [col-even C | col-odd C]
#   w_ref : (K, C_out)        -- K = 2C (avg, pool folded into weight) or C (max)
#   b_ref : (1, C_out)        -- f32 bias
#   o_ref : (RB*W2, C_out)    -- flattened (rows, pixels) for dense stores

def _pool_expand_avg_kernel(x_ref, w_ref, b_ref, o_ref):
    rb, _, w2, two_c = x_ref.shape
    x = x_ref[...]
    rows = x[:, 0] + x[:, 1]                              # row-pair sum, input dtype
    # Column-pair sum + 0.25 avg scale are folded into w_ref (K = 2C) by the wrapper.
    y = jnp.dot(rows.reshape(rb * w2, two_c), w_ref[...],
                preferred_element_type=jnp.float32)
    o_ref[...] = (y + b_ref[...]).astype(o_ref.dtype)


def _pool_expand_max_kernel(x_ref, w_ref, b_ref, o_ref):
    rb, _, w2, two_c = x_ref.shape
    c = two_c // 2
    x = x_ref[...]
    rows = jnp.maximum(x[:, 0], x[:, 1])
    pooled = jnp.maximum(rows[..., :c], rows[..., c:])    # (RB, W2, C)
    y = jnp.dot(pooled.reshape(rb * w2, c), w_ref[...],
                preferred_element_type=jnp.float32)
    o_ref[...] = (y + b_ref[...]).astype(o_ref.dtype)


def _pool_only_avg_kernel(x_ref, o_ref):
    rb, _, w2, two_c = x_ref.shape
    c = two_c // 2
    x = x_ref[...]
    # Cast per-slab (not the whole tile) so the f32 live footprint stays small (v5e).
    rows = x[:, 0].astype(jnp.float32) + x[:, 1].astype(jnp.float32)
    pooled = (rows[..., :c] + rows[..., c:]) * 0.25
    o_ref[...] = pooled.reshape(rb * w2, c).astype(o_ref.dtype)


def _pool_only_max_kernel(x_ref, o_ref):
    rb, _, w2, two_c = x_ref.shape
    c = two_c // 2
    x = x_ref[...]
    rows = jnp.maximum(x[:, 0], x[:, 1])
    pooled = jnp.maximum(rows[..., :c], rows[..., c:])
    o_ref[...] = pooled.reshape(rb * w2, c).astype(o_ref.dtype)


# --------------------------- tile sizing (VMEM-aware) -------------------------------
def _vmem_limit_bytes():
    """Generation-aware scoped-VMEM limit (half of physical, capped at 64 MiB)."""
    try:
        phys = int(pltpu.get_tpu_info().vmem_capacity_bytes)
    except Exception:
        phys = 64 * 1024 * 1024          # conservative fallback (v7x per-core)
    return int(min(phys // 2, 64 * 1024 * 1024))


def _choose_rb(R, W2, C, C_out, K, itemsize, has_expand, vmem_limit):
    """Largest row-block whose *honest* VMEM footprint fits the budget."""
    budget = vmem_limit * 3 // 4                       # headroom for compiler scratch
    in_row = 2 * W2 * 2 * C * itemsize                 # input bytes per output row
    out_row = W2 * C_out * itemsize
    # in-kernel temporaries: pooled rows (+reshape copy) and f32 accumulator/cast
    tmp_row = 2 * W2 * 2 * C * itemsize + W2 * C_out * (4 + itemsize)
    per_row = 2 * in_row + 2 * out_row + tmp_row       # 2x = Pallas double buffering
    fixed = (2 * K * C_out * itemsize + 2 * C_out * 4) if has_expand else 0

    rb = max(1, (budget - fixed) // max(per_row, 1))
    rb = min(rb, R)
    if R >= 2:
        rb = min(rb, (R + 1) // 2)       # >= 2 grid steps so both v7x TCs get work
    # Keep the flattened output block (rb*W2 rows) sublane-aligned for dense stores.
    sublane = {4: 8, 2: 16, 1: 32}.get(itemsize, 8)
    mult = sublane // math.gcd(W2, sublane)
    rb = (rb // mult) * mult
    if rb <= 0 or rb > R:
        rb = R                           # single block: dims equal full array extents
    return int(rb)


# --------------------------------- NHWC entry point ---------------------------------
def downsample2d_nhwc(x_nhwc, expand_w=None, expand_b=None, *, pool_type="avg2"):
    """Fused Downsample2d, channels-last.

    x_nhwc:   (B, H, W, C)
    expand_w: (C_out, C) or (C_out, C, 1, 1) PyTorch 1x1-conv weight, or None for
              Identity expand (dim == dim_out).
    expand_b: (C_out,) or None.
    Returns (B, H//2, W//2, C_out) in NHWC -- no layout transposes anywhere.
    """
    assert pool_type in ("avg2", "max2")
    # TODO(synk): 3x3/stride-2/pad-1 'avg'/'max' pool variants not implemented.

    B, H, W, C = x_nhwc.shape
    H2, W2 = H // 2, W // 2
    assert H2 > 0 and W2 > 0
    if (H % 2) or (W % 2):
        # PyTorch pooling (padding=0) floors odd spatial dims: crop the trailing row/col.
        x_nhwc = x_nhwc[:, : 2 * H2, : 2 * W2, :]

    dtype = x_nhwc.dtype
    itemsize = jnp.dtype(dtype).itemsize
    is_max = pool_type == "max2"
    has_expand = expand_w is not None

    if has_expand:
        w2d = jnp.asarray(expand_w)
        w2d = w2d.reshape(w2d.shape[0], -1)                  # (C_out, C)
        C_out = int(w2d.shape[0])
        assert w2d.shape[1] == C
        wk = jnp.transpose(w2d, (1, 0)).astype(dtype)        # (C, C_out)
        if not is_max:
            # Fold the 2x2-average 0.25 scale AND the column-pair sum into the
            # contraction: K = 2C (fills the 256-deep MXU exactly when C == 128).
            wk = (jnp.concatenate([wk, wk], axis=0) * 0.25).astype(dtype)
        K = int(wk.shape[0])
        if expand_b is None:
            bk = jnp.zeros((1, C_out), jnp.float32)
        else:
            bk = jnp.asarray(expand_b, jnp.float32).reshape(1, C_out)
    else:
        C_out, K = C, C

    R = B * H2
    # Contiguous regroup (no data movement): one leading index per *output* row,
    # the 2x2 window packed as (row-in-pair, W2, [col-even C | col-odd C]).
    xr = x_nhwc.reshape(R, 2, W2, 2 * C)

    vmem_limit = _vmem_limit_bytes()
    rb = _choose_rb(R, W2, C, C_out, K, itemsize, has_expand, vmem_limit)
    n_steps = pl.cdiv(R, rb)             # ragged last block; no rb=1 degeneration

    cparams = pltpu.CompilerParams(
        dimension_semantics=("parallel",),
        vmem_limit_bytes=vmem_limit,
    )

    if has_expand:
        kern = _pool_expand_max_kernel if is_max else _pool_expand_avg_kernel
        out_flat = pl.pallas_call(
            kern,
            out_shape=jax.ShapeDtypeStruct((R * W2, C_out), dtype),
            grid_spec=pltpu.PrefetchScalarGridSpec(
                num_scalar_prefetch=0,
                grid=(n_steps,),
                in_specs=[
                    pl.BlockSpec((rb, 2, W2, 2 * C), lambda i: (i, 0, 0, 0)),
                    pl.BlockSpec((K, C_out), lambda i: (0, 0)),
                    pl.BlockSpec((1, C_out), lambda i: (0, 0)),
                ],
                out_specs=pl.BlockSpec((rb * W2, C_out), lambda i: (i, 0)),
            ),
            compiler_params=cparams,
        )(xr, wk, bk)
    else:
        kern = _pool_only_max_kernel if is_max else _pool_only_avg_kernel
        out_flat = pl.pallas_call(
            kern,
            out_shape=jax.ShapeDtypeStruct((R * W2, C), dtype),
            grid_spec=pltpu.PrefetchScalarGridSpec(
                num_scalar_prefetch=0,
                grid=(n_steps,),
                in_specs=[pl.BlockSpec((rb, 2, W2, 2 * C), lambda i: (i, 0, 0, 0))],
                out_specs=pl.BlockSpec((rb * W2, C), lambda i: (i, 0)),
            ),
            compiler_params=cparams,
        )(xr)

    return out_flat.reshape(B, H2, W2, C_out)


# ---------------------- NCHW compatibility wrapper (PyTorch I/O) --------------------
def downsample2d(x_nchw, expand_w=None, expand_b=None, *, pool_type="avg2"):
    """Drop-in NCHW interface matching the PyTorch module.  The two transposes here
    are pure layout glue and cost extra HBM passes -- prefer downsample2d_nhwc in a
    channels-last model."""
    x_nhwc = jnp.transpose(x_nchw, (0, 2, 3, 1))
    y = downsample2d_nhwc(x_nhwc, expand_w, expand_b, pool_type=pool_type)
    return jnp.transpose(y, (0, 3, 1, 2))


# ----------------------------- reference (pure JAX) ---------------------------------
def reference_downsample2d_nchw(x, w, b, pool_type="avg2"):
    B, C, H, W = x.shape
    H2, W2 = H // 2, W // 2
    xp = x[:, :, : 2 * H2, : 2 * W2].reshape(B, C, H2, 2, W2, 2)
    p = xp.max(axis=(3, 5)) if pool_type == "max2" else xp.mean(axis=(3, 5))
    if w is None:
        return p
    w2d = jnp.asarray(w).reshape(w.shape[0], -1)
    out = jnp.einsum("bchw,oc->bohw", p, w2d)
    if b is not None:
        out = out + b[None, :, None, None]
    return out


def reference_downsample2d_nhwc(x, pool_type="avg2"):
    B, H, W, C = x.shape
    H2, W2 = H // 2, W // 2
    xp = x[:, : 2 * H2, : 2 * W2, :].reshape(B, H2, 2, W2, 2, C)
    return xp.max(axis=(2, 4)) if pool_type == "max2" else xp.mean(axis=(2, 4))


# ------------------------------------- main ------------------------------------------
if __name__ == "__main__":
    key = jax.random.PRNGKey(0)
    kx, kw, kb, kx2 = jax.random.split(key, 4)

    # Small shapes: Downsample2d(dim=4, dim_out=8, pool_type='avg2') on (2, 4, 16, 16).
    B, C, H, W = 2, 4, 16, 16
    C_OUT = 8

    x = jax.random.normal(kx, (B, C, H, W), jnp.float32)
    bound = 1.0 / np.sqrt(C)
    w = jax.random.uniform(kw, (C_OUT, C), jnp.float32, -bound, bound)  # 1x1 conv weight
    b = jax.random.uniform(kb, (C_OUT,), jnp.float32, -bound, bound)

    # 1) avg2 + 1x1-conv expand, NCHW compatibility interface.
    out = jax.block_until_ready(downsample2d(x, w, b, pool_type="avg2"))
    assert out.shape == (B, C_OUT, H // 2, W // 2)
    with jax.default_matmul_precision("float32"):
        ref = reference_downsample2d_nchw(x, w, b, "avg2")
    np.testing.assert_allclose(np.asarray(out), np.asarray(ref), rtol=1e-2, atol=1e-2)

    # 2) max2 + 1x1-conv expand, NCHW interface.
    out_m = jax.block_until_ready(downsample2d(x, w, b, pool_type="max2"))
    with jax.default_matmul_precision("float32"):
        ref_m = reference_downsample2d_nchw(x, w, b, "max2")
    np.testing.assert_allclose(np.asarray(out_m), np.asarray(ref_m), rtol=1e-2, atol=1e-2)

    # 3) avg2 with Identity expand (dim == dim_out), transpose-free NHWC path.
    x_nhwc = jax.random.normal(kx2, (B, H, W, C), jnp.float32)
    out_id = jax.block_until_ready(downsample2d_nhwc(x_nhwc, None, None, pool_type="avg2"))
    assert out_id.shape == (B, H // 2, W // 2, C)
    ref_id = reference_downsample2d_nhwc(x_nhwc, "avg2")
    np.testing.assert_allclose(np.asarray(out_id), np.asarray(ref_id), rtol=1e-2, atol=1e-2)

    print("KERNEL_OK")
</pallas_src>

<mosaic_0001>
module attributes {stable_mosaic.version = 11 : i64} {
  func.func @_pool_expand_avg_kernel(%arg0: i32, %arg1: memref<8x2x8x8xf32, #tpu.memory_space<vmem>>, %arg2: memref<8x8xf32, #tpu.memory_space<vmem>>, %arg3: memref<1x8xf32, #tpu.memory_space<vmem>>, %arg4: memref<64x8xf32, #tpu.memory_space<vmem>>) attributes {dimension_semantics = [#tpu.dimension_semantics<parallel>], iteration_bounds = array<i64: 2>, scalar_prefetch = 0 : i64, scratch_operands = 0 : i64, tpu.core_type = #tpu.core_type<tc>, window_params = [{transform_indices = @transform_0, window_bounds = array<i64: 8, 2, 8, 8>}, {pipeline_mode = #tpu.pipeline_mode<synchronous>, transform_indices = @transform_1, window_bounds = array<i64: 8, 8>}, {pipeline_mode = #tpu.pipeline_mode<synchronous>, transform_indices = @transform_2, window_bounds = array<i64: 1, 8>}, {transform_indices = @transform_3, window_bounds = array<i64: 64, 8>}]} {
    %c0 = arith.constant 0 : index
    %c0_0 = arith.constant 0 : index
    %c0_1 = arith.constant 0 : index
    %c0_2 = arith.constant 0 : index
    %0 = vector.load %arg1[%c0, %c0_0, %c0_1, %c0_2] : memref<8x2x8x8xf32, #tpu.memory_space<vmem>>, vector<8x2x8x8xf32>
    %1 = vector.extract_strided_slice %0 {offsets = [0, 0, 0, 0], sizes = [8, 1, 8, 8], strides = [1, 1, 1, 1]} : vector<8x2x8x8xf32> to vector<8x1x8x8xf32>
    %2 = vector.shape_cast %1 : vector<8x1x8x8xf32> to vector<8x8x8xf32>
    %3 = vector.extract_strided_slice %0 {offsets = [0, 1, 0, 0], sizes = [8, 1, 8, 8], strides = [1, 1, 1, 1]} : vector<8x2x8x8xf32> to vector<8x1x8x8xf32>
    %4 = vector.shape_cast %3 : vector<8x1x8x8xf32> to vector<8x8x8xf32>
    %5 = arith.addf %2, %4 : vector<8x8x8xf32>
    %6 = vector.shape_cast %5 : vector<8x8x8xf32> to vector<64x8xf32>
    %c0_3 = arith.constant 0 : index
    %c0_4 = arith.constant 0 : index
    %7 = vector.load %arg2[%c0_3, %c0_4] : memref<8x8xf32, #tpu.memory_space<vmem>>, vector<8x8xf32>
    %cst = arith.constant dense<0.000000e+00> : vector<64x8xf32>
    %8 = tpu.matmul %6, %7, %cst {dimension_numbers = #tpu.dot_dimension_numbers<[1], [0], [0], [1], [0, 0, 1, 1], [], []>} : vector<64x8xf32>, vector<8x8xf32>, vector<64x8xf32> -> vector<64x8xf32>
    %c0_5 = arith.constant 0 : index
    %c0_6 = arith.constant 0 : index
    %9 = vector.load %arg3[%c0_5, %c0_6] : memref<1x8xf32, #tpu.memory_space<vmem>>, vector<1x8xf32>
    %10 = vector.broadcast %9 : vector<1x8xf32> to vector<64x8xf32>
    %11 = arith.addf %8, %10 : vector<64x8xf32>
    %c0_7 = arith.constant 0 : index
    %c0_8 = arith.constant 0 : index
    %12 = vector.load %arg4[%c0_7, %c0_8] : memref<64x8xf32, #tpu.memory_space<vmem>>, vector<64x8xf32>
    tpu.vector_store %arg4[%c0_7, %c0_8], %11 {strides = array<i32>} : memref<64x8xf32, #tpu.memory_space<vmem>>, vector<64x8xf32>,
    return
  }
  func.func @transform_0(%arg0: i32) -> (i32, i32, i32, i32) {
    %c0_i32 = arith.constant 0 : i32
    %c0_i32_0 = arith.constant 0 : i32
    %c0_i32_1 = arith.constant 0 : i32
    %c0_i32_2 = arith.constant 0 : i32
    return %arg0, %c0_i32, %c0_i32_0, %c0_i32_1 : i32, i32, i32, i32
  }
  func.func @transform_1(%arg0: i32) -> (i32, i32) {
    %c0_i32 = arith.constant 0 : i32
    %c0_i32_0 = arith.constant 0 : i32
    %c0_i32_1 = arith.constant 0 : i32
    return %c0_i32, %c0_i32_0 : i32, i32
  }
  func.func @transform_2(%arg0: i32) -> (i32, i32) {
    %c0_i32 = arith.constant 0 : i32
    %c0_i32_0 = arith.constant 0 : i32
    %c0_i32_1 = arith.constant 0 : i32
    return %c0_i32, %c0_i32_0 : i32, i32
  }
  func.func @transform_3(%arg0: i32) -> (i32, i32) {
    %c0_i32 = arith.constant 0 : i32
    %c0_i32_0 = arith.constant 0 : i32
    return %arg0, %c0_i32 : i32, i32
  }
}

</mosaic_0001>

<bundles_post_ra>
// kernel: tpu_custom_call.1
= control target key start
LH: loop header
LB: loop body
LE: loop exit
PB: predicated region body
PF: predicated region fallthrough
CT: control target
= control target key end

     0   :  { %s486_s12 = smov 0   ;;  %s529_s0 = inlined_call_operand.vmem [shape: f32[16,2,8,8], index: 0, kind: input, shape index: {}]   ;;  %s530_s1 = inlined_call_operand.vmem [shape: f32[8,8], index: 1, kind: input, shape index: {}]   ;;  %s531_s2 = inlined_call_operand.vmem [shape: f32[1,8], index: 2, kind: input, shape index: {}]   ;;  %s532_s3 = inlined_call_operand.vmem [shape: f32[128,8], index: 3, kind: output, shape index: {}]  }
   0x1 LB: > { %s403_s13 = sadd.s32 4294967295, %s464_s12   ;;  %p407_p0 = scmp.ge.s32.totalorder %s464_s12, 1  ;;  %s464_s12 = sphi %s486_s12, %s13_s12  }
   0x2   : > { %p139_p1 = scmp.lt.s32.totalorder %s464_s12, 3 }
   0x4   : > { %p140_p2 = pnand %p407_p0, %p139_p1 }
   0x5   : > { %v201_v0 = vld [vmem:[%s530_s1] sm:$0xff] (!%p140_p2)  ;;  %s408_s16 = sshll.u32 (!%p140_p2), %s403_s13, 3  ;;  %vm209_vm0 = vcmask (!%p140_p2), 64512  }
   0x6   : > { %143 = sbr.rel (%p140_p2) target bundleno = 241 (0xf1), region = 32  ;;  %434 = vmatprep.subr.mxu0 (!%p140_p2), %v201_v0  ;;  %448 = vmatprep.subr.mxu1 (!%p140_p2), %v201_v0  ;;  %p165_p3 = scmp.lt.s32.totalorder (!%p140_p2), %s408_s16, 15  ;;  %v413_v25 = vld [vmem:[%s531_s2] ss:$0 sm:$0xff] (!%p140_p2) }
   0x7   : > { %435 = vmatpush3.msra.mxu0 (!%p140_p2), %v201_v0  ;;  %449 = vmatpush3.msra.mxu1 (!%p140_p2), %v201_v0 }
   0xd   : > { %s534_s16 = smov (!%p165_p3, %s408_s16), 15 }
   0xe   : > { %s424_s17 = sshll.u32 %s534_s16, 4  ;;  %s412_s21 = sshll.u32 %s534_s16, 3 }
   0xf   : > { %s169_s20 = scalar_lea.vmem %s529_s0, %s424_s17  ;;  %s175_s26 = scalar_lea.vmem %s532_s3, %s412_s21 }
  0x10   : > { %v177_v1 = vld [vmem:[%s169_s20] sm:$0xff]  ;;  %v178_v2 = vld [vmem:[%s169_s20 + $0x8] sm:$0xff]  ;;  %v179_v6 = vld [vmem:[%s169_s20 + $0x10] sm:$0xff] }
  0x11   : > { %v185_v3 = vld [vmem:[%s169_s20 + $0x40] sm:$0xff]  ;;  %v193_v4 = vadd.f32 %v178_v2, %v177_v1  ;;  %v186_v5 = vld [vmem:[%s169_s20 + $0x48] sm:$0xff]  ;;  %v180_v7 = vld [vmem:[%s169_s20 + $0x18] sm:$0xff] }
  0x12   : > { %v197_v8 = vadd.f32 %v186_v5, %v185_v3  ;;  %v194_v9 = vadd.f32 %v180_v7, %v179_v6  ;;  %v187_v10 = vld [vmem:[%s169_s20 + $0x50] sm:$0xff]  ;;  %v188_v11 = vld [vmem:[%s169_s20 + $0x58] sm:$0xff]  ;;  %v181_v12 = vld [vmem:[%s169_s20 + $0x20] sm:$0xff] }
  0x13   : > { %436 = vmatprep.mubr.msk.f32.mxu0 %vm209_vm0, %v193_v4  ;;  %v198_v13 = vadd.f32 %v188_v11, %v187_v10  ;;  %v182_v14 = vld [vmem:[%s169_s20 + $0x28] sm:$0xff]  ;;  %v189_v15 = vld [vmem:[%s169_s20 + $0x60] sm:$0xff]  ;;  %v183_v19 = vld [vmem:[%s169_s20 + $0x30] sm:$0xff] }
  0x14   : > { %v190_v16 = vld [vmem:[%s169_s20 + $0x68] sm:$0xff]  ;;  %442 = vmatprep.mubr.msk.f32.mxu1 %vm209_vm0, %v197_v8  ;;  %437 = vmatmul.mubr.msk.f32.vlgmr.msra.gmra.mrb[0].mxu0 %vm209_vm0, %v194_v9  ;;  %v195_v17 = vadd.f32 %v182_v14, %v181_v12  ;;  %v184_v20 = vld [vmem:[%s169_s20 + $0x38] sm:$0xff]  ;;  %v191_v21 = vld [vmem:[%s169_s20 + $0x70] sm:$0xff] }
  0x15   : > { %v199_v18 = vadd.f32 %v190_v16, %v189_v15  ;;  %443 = vmatmul.mubr.msk.f32.vlgmr.msra.gmra.mrb[0].mxu1 %vm209_vm0, %v198_v13  ;;  %v196_v22 = vadd.f32 %v184_v20, %v183_v19  ;;  %v192_v23 = vld [vmem:[%s169_s20 + $0x78] sm:$0xff] }
  0x16   : > { %439 = vmatprep.mubr.msk.f32.mxu0 %vm209_vm0, %v195_v17  ;;  %v200_v24 = vadd.f32 %v192_v23, %v191_v21 }
  0x17   : > { %445 = vmatprep.mubr.msk.f32.mxu1 %vm209_vm0, %v199_v18 }
  0x18   : > { %440 = vmatmul.mubr.msk.f32.gmra.mrb[2].mxu0 %vm209_vm0, %v196_v22 }
  0x19   : > { %446 = vmatmul.mubr.msk.f32.gmra.mrb[2].mxu1 %vm209_vm0, %v200_v24 }
  0xe7   : > { %v438_v26 = vpop.f32.mrb[0].mxu0 }
  0xe8   : > { %v306_v27 = vadd.f32 %v438_v26, %v413_v25  ;;  %v444_v28 = vpop.f32.mrb[0].mxu1  ;;  %v300_v29 = vpop.f32.mrb[1].mxu0 }
  0xe9   : > { %v326_v30 = vadd.f32 %v444_v28, %v413_v25  ;;  %v301_v31 = vadd.f32 %v413_v25, %v300_v29  ;;  %v320_v32 = vpop.f32.mrb[1].mxu1 }
  0xea   : > { %340 = vst.msk [vmem:[%s175_s26 + $0x8] sm:$0xff] %vm209_vm0, %v306_v27  ;;  %v321_v33 = vadd.f32 %v413_v25, %v320_v32 }
  0xeb   : > { %344 = vst.msk [vmem:[%s175_s26 + $0x28] sm:$0xff] %vm209_vm0, %v326_v30  ;;  %339 = vst.msk [vmem:[%s175_s26] sm:$0xff] %vm209_vm0, %v301_v31  ;;  %v441_v34 = vpop.f32.mrb[2].mxu0 }
  0xec   : > { %343 = vst.msk [vmem:[%s175_s26 + $0x20] sm:$0xff] %vm209_vm0, %v321_v33  ;;  %v316_v35 = vadd.f32 %v441_v34, %v413_v25  ;;  %v447_v36 = vpop.f32.mrb[2].mxu1  ;;  %v310_v37 = vpop.f32.mrb[3].mxu0 }
  0xed   : > { %v336_v38 = vadd.f32 %v447_v36, %v413_v25  ;;  %v311_v39 = vadd.f32 %v413_v25, %v310_v37  ;;  %v330_v40 = vpop.f32.mrb[3].mxu1 }
  0xee   : > { %342 = vst.msk [vmem:[%s175_s26 + $0x18] sm:$0xff] %vm209_vm0, %v316_v35  ;;  %v331_v41 = vadd.f32 %v413_v25, %v330_v40 }
  0xef   : > { %346 = vst.msk [vmem:[%s175_s26 + $0x38] sm:$0xff] %vm209_vm0, %v336_v38  ;;  %341 = vst.msk [vmem:[%s175_s26 + $0x10] sm:$0xff] %vm209_vm0, %v311_v39 }
  0xf0   : > { %345 = vst.msk [vmem:[%s175_s26 + $0x30] sm:$0xff] %vm209_vm0, %v331_v41 }
  0xf1 PF: > { %s13_s12 = sadd.s32 1, %s464_s12  }
  0xf2   : > { %p10_p4 = scmp.ge.s32.totalorder %s13_s12, 4  }
  0xf4   :  { %12 = sbr.rel (!%p10_p4) target bundleno = 1 (0x1), region = 62 }

</bundles_post_ra>
